<compile_context>
chip_gen: v6e
topology: v6e:2x2x1
jax: 0.10.0
libtpu: 0.0.40
codegen_flags: <defaults>
</compile_context>

<pallas_src>
import jax
import jax.numpy as jnp
from jax.experimental import pallas as pl
from jax.experimental.pallas import tpu as pltpu


# ----------------------------------------------------------------------------
# NonNegativeParametrizer (CompressAI) reproduced in plain JAX (parameter glue)
# ----------------------------------------------------------------------------
_REPARAM_OFFSET = 2.0 ** -18
_PEDESTAL = _REPARAM_OFFSET ** 2


def nonneg_init(x):
    # init(x) = sqrt(max(x + pedestal, pedestal))
    return jnp.sqrt(jnp.maximum(x + _PEDESTAL, _PEDESTAL))


def nonneg_forward(x, minimum=0.0):
    # forward(x) = lower_bound(x, sqrt(minimum + pedestal)) ** 2 - pedestal
    bound = (minimum + _PEDESTAL) ** 0.5
    out = jnp.maximum(x, bound)
    return out * out - _PEDESTAL


# ----------------------------------------------------------------------------
# Pallas kernel: per-pixel GDN / IGDN on a (C, tile_hw) slab
# ----------------------------------------------------------------------------
def _make_gdn_kernel(inverse):
    def kernel(x_ref, gamma_ref, beta_ref, o_ref):
        x = x_ref[...]                                   # (C, T), native dtype
        xf = x.astype(jnp.float32)                       # elementwise in f32
        x2 = (xf * xf).astype(gamma_ref.dtype)           # matmul operand dtype
        # norm[i, p] = sum_j gamma[i, j] * x[j, p]^2   (MXU, f32 accumulation)
        norm = jnp.dot(gamma_ref[...], x2,
                       preferred_element_type=jnp.float32)
        norm = norm + beta_ref[...]                      # beta: (C, 1), f32
        scale = jnp.sqrt(norm) if inverse else jax.lax.rsqrt(norm)
        o_ref[...] = (xf * scale).astype(o_ref.dtype)
    return kernel


# ----------------------------------------------------------------------------
# Tiling / VMEM helpers (generation-aware)
# ----------------------------------------------------------------------------
_MIN_TILE = 512                 # lane floor (review: raise from 128 -> 512)
_BLOCK_BYTES_TARGET = 3 << 20   # ~3 MiB per x block (2-4 MiB sweet spot)
_MIN_TOTAL_STEPS = 4            # keep both v7x TCs busy + allow pipelining


def _vmem_capacity_bytes():
    try:
        return int(pltpu.get_tpu_info().vmem_capacity_bytes)
    except Exception:
        return 64 * 1024 * 1024   # conservative fallback (v7x physical VMEM)


def _cdiv(a, b):
    return -(-a // b)


def _select_tile_hw(HW, C, itemsize, N, budget_bytes):
    """Pick a lane-dense pixel tile (multiple of 128, or full extent HW)."""
    # Largest tile allowed by the double-buffered x+y VMEM budget.
    cap = max(_MIN_TILE, (budget_bytes // (4 * C * itemsize)) // 128 * 128)
    # Tile that lands each x block at ~_BLOCK_BYTES_TARGET.
    want = (_BLOCK_BYTES_TARGET // (C * itemsize)) // 128 * 128
    want = max(_MIN_TILE, min(max(want, 128), cap))
    if HW > want:
        return want
    # Whole image fits in one tile.  Still split the pixel axis when the total
    # grid would otherwise be too small to pipeline / feed both v7x TCs.
    if N >= _MIN_TOTAL_STEPS or HW < 2 * 128:
        return HW                     # full-extent lane dim (always legal)
    splits = min(_cdiv(_MIN_TOTAL_STEPS, N), HW // 128)
    if splits <= 1:
        return HW
    return max(128, (HW // splits) // 128 * 128)


def gdn_pallas_nchw(x_nchw, gamma, beta, *, inverse=False, tile_hw=None,
                    mxu_bf16_ops=False):
    """x_nchw: (N, C, H, W). gamma: (C, C). beta: (C,). Returns (N, C, H, W).

    mxu_bf16_ops: for f32 activations, run the gamma contraction with bf16
    operands (f32 accumulation).  Avoids multi-pass f32 MXU lowering on v5e;
    gated behind a flag because it costs ~8 mantissa bits per product.
    """
    N, C, H, W = x_nchw.shape
    HW = H * W
    x3 = x_nchw.reshape(N, C, HW)          # contiguous reshape, no data movement

    # Matmul operand dtype: follow the activation dtype (bf16 I/O stays bf16);
    # optionally drop f32 operands to bf16.  Beta-add / rsqrt / final multiply
    # stay in f32 for accuracy.
    mm_dtype = x3.dtype
    if mxu_bf16_ops and jnp.dtype(mm_dtype) == jnp.float32:
        mm_dtype = jnp.bfloat16
    gamma_c = gamma.astype(mm_dtype)
    beta_2d = beta.astype(jnp.float32).reshape(C, 1)
    itemsize = int(jnp.dtype(x3.dtype).itemsize)
    gamma_itemsize = int(jnp.dtype(gamma_c.dtype).itemsize)

    # --- generation-aware budgets --------------------------------------------
    vmem_cap = _vmem_capacity_bytes()
    # Budget for double-buffered x+y tiles: ~40 MiB on v7x (64 MiB physical),
    # ~80 MiB on v5e/v6e (128 MiB physical).
    tile_budget = min(int(0.625 * vmem_cap), 96 << 20)

    # --- pixel-tile selection -------------------------------------------------
    if tile_hw is None:
        tile_hw = _select_tile_hw(HW, C, itemsize, N, tile_budget)
    grid_hw = _cdiv(HW, tile_hw)           # ragged tail handled by Pallas masking

    # --- explicit VMEM limit (double-buffered x & y tiles + params) ----------
    vmem_needed = (4 * C * tile_hw * itemsize            # 2 bufs each for x and y
                   + 2 * C * C * gamma_itemsize
                   + 2 * C * 4)
    vmem_cap_limit = min(int(0.75 * vmem_cap), 96 << 20)  # <= 48 MiB on v7x
    vmem_limit = int(min(max(2 * vmem_needed + (4 << 20), 16 << 20),
                         vmem_cap_limit))

    cost = pl.CostEstimate(
        flops=2 * N * HW * C * C,
        transcendentals=N * HW * C,
        bytes_accessed=2 * N * C * HW * itemsize
                       + C * C * gamma_itemsize + C * 4,
    )

    kernel = _make_gdn_kernel(inverse)
    # TODO(synk): if an xprof trace shows exposed DMA at large C, add
    # pipeline_mode=pl.Buffered(3) on the x spec and budget the extra tile.
    y3 = pl.pallas_call(
        kernel,
        out_shape=jax.ShapeDtypeStruct((N, C, HW), x3.dtype),
        grid_spec=pltpu.PrefetchScalarGridSpec(
            num_scalar_prefetch=0,
            grid=(N, grid_hw),
            in_specs=[
                # x slab: batch dim squeezed, channels on sublanes, pixels on lanes
                pl.BlockSpec((None, C, tile_hw), lambda n, t: (n, 0, t)),
                # gamma / beta: constant index_map -> fetched once, reused
                pl.BlockSpec((C, C), lambda n, t: (0, 0)),
                pl.BlockSpec((C, 1), lambda n, t: (0, 0)),
            ],
            out_specs=pl.BlockSpec((None, C, tile_hw), lambda n, t: (n, 0, t)),
        ),
        compiler_params=pltpu.CompilerParams(
            dimension_semantics=("parallel", "parallel"),
            vmem_limit_bytes=vmem_limit),
        cost_estimate=cost,
    )(x3, gamma_c, beta_2d)
    return y3.reshape(N, C, H, W)


# ----------------------------------------------------------------------------
# GDN module wrapper (NCHW in / NCHW out, matching the PyTorch forward)
# ----------------------------------------------------------------------------
class GDNPallas:
    def __init__(self, in_channels, inverse=False, beta_min=1e-6, gamma_init=0.1):
        self.inverse = bool(inverse)
        self.beta_min = float(beta_min)
        # Deterministic init identical to the PyTorch module's __init__.
        beta = jnp.ones((in_channels,), jnp.float32)
        self.beta_param = nonneg_init(beta)
        gamma = float(gamma_init) * jnp.eye(in_channels, dtype=jnp.float32)
        self.gamma_param = nonneg_init(gamma)

    def __call__(self, x_nchw, tile_hw=None, mxu_bf16_ops=False):
        beta = nonneg_forward(self.beta_param, minimum=self.beta_min)   # (C,)
        gamma = nonneg_forward(self.gamma_param, minimum=0.0)           # (C, C)
        return gdn_pallas_nchw(x_nchw, gamma, beta,
                               inverse=self.inverse, tile_hw=tile_hw,
                               mxu_bf16_ops=mxu_bf16_ops)


# ----------------------------------------------------------------------------
# Reference (plain JAX) for verification
# ----------------------------------------------------------------------------
def gdn_reference(x_nchw, beta_param, gamma_param, inverse, beta_min):
    beta = nonneg_forward(beta_param, minimum=beta_min)    # (C,)
    gamma = nonneg_forward(gamma_param, minimum=0.0)       # (C, C)
    xf = x_nchw.astype(jnp.float32)
    x2 = xf ** 2
    norm = jnp.einsum("ncuv,kc->nkuv", x2, gamma) + beta[None, :, None, None]
    norm = jnp.sqrt(norm) if inverse else jax.lax.rsqrt(norm)
    return (xf * norm).astype(x_nchw.dtype)


if __name__ == "__main__":
    key = jax.random.PRNGKey(0)
    k1, k2 = jax.random.split(key, 2)

    # Primary test (spec shapes): GDN forward.  Auto tiling splits HW=256 into
    # two 128-lane tiles -> grid (2, 2): multi-step pipeline, both TCs on v7x.
    N, C, H, W = 2, 4, 16, 16
    x = jax.random.normal(k1, (N, C, H, W), dtype=jnp.float32)
    gdn = GDNPallas(in_channels=C, inverse=False)
    y = jax.block_until_ready(gdn(x))
    y_ref = gdn_reference(x, gdn.beta_param, gdn.gamma_param,
                          inverse=False, beta_min=gdn.beta_min)
    assert y.shape == (N, C, H, W)
    assert jnp.allclose(y, y_ref, atol=1e-5, rtol=1e-5), "GDN mismatch vs reference"

    # IGDN (inverse) path with an explicit 128-lane tile (2 tiles over H*W).
    igdn = GDNPallas(in_channels=C, inverse=True)
    y_i = jax.block_until_ready(igdn(x, tile_hw=128))
    y_i_ref = gdn_reference(x, igdn.beta_param, igdn.gamma_param,
                            inverse=True, beta_min=igdn.beta_min)
    assert jnp.allclose(y_i, y_i_ref, atol=1e-5, rtol=1e-5), "IGDN mismatch vs reference"

    # Ragged H*W: 20x20 = 400 pixels with tile_hw=256 -> cdiv grid, masked tail.
    x_r = jax.random.normal(k2, (1, C, 20, 20), dtype=jnp.float32)
    y_r = jax.block_until_ready(gdn(x_r, tile_hw=256))
    y_r_ref = gdn_reference(x_r, gdn.beta_param, gdn.gamma_param,
                            inverse=False, beta_min=gdn.beta_min)
    assert jnp.allclose(y_r, y_r_ref, atol=1e-5, rtol=1e-5), "ragged-tile mismatch"

    # bf16 activations (native-dtype I/O path), looser tolerance.
    x_b = x.astype(jnp.bfloat16)
    y_b = jax.block_until_ready(gdn(x_b))
    y_b_ref = gdn_reference(x_b, gdn.beta_param, gdn.gamma_param,
                            inverse=False, beta_min=gdn.beta_min)
    assert jnp.allclose(y_b.astype(jnp.float32), y_b_ref.astype(jnp.float32),
                        atol=3e-2, rtol=3e-2), "bf16-activation mismatch"

    # f32 activations with bf16 MXU operands (v5e fast path), looser tolerance.
    y_m = jax.block_until_ready(gdn(x, mxu_bf16_ops=True))
    assert jnp.allclose(y_m, y_ref, atol=2e-2, rtol=2e-2), "bf16-MXU-operand mismatch"

    print("KERNEL_OK")
</pallas_src>

<mosaic_0001>
module attributes {stable_mosaic.version = 11 : i64} {
  func.func @kernel(%arg0: i32, %arg1: i32, %arg2: memref<1x4x128xf32, #tpu.memory_space<vmem>>, %arg3: memref<4x4xf32, #tpu.memory_space<vmem>>, %arg4: memref<4x1xf32, #tpu.memory_space<vmem>>, %arg5: memref<1x4x128xf32, #tpu.memory_space<vmem>>) attributes {dimension_semantics = [#tpu.dimension_semantics<parallel>, #tpu.dimension_semantics<parallel>], iteration_bounds = array<i64: 2, 2>, scalar_prefetch = 0 : i64, scratch_operands = 0 : i64, tpu.core_type = #tpu.core_type<tc>, window_params = [{transform_indices = @transform_0, window_bounds = array<i64: 1, 4, 128>}, {pipeline_mode = #tpu.pipeline_mode<synchronous>, transform_indices = @transform_1, window_bounds = array<i64: 4, 4>}, {pipeline_mode = #tpu.pipeline_mode<synchronous>, transform_indices = @transform_2, window_bounds = array<i64: 4, 1>}, {transform_indices = @transform_3, window_bounds = array<i64: 1, 4, 128>}]} {
    %c0 = arith.constant 0 : index
    %c0_0 = arith.constant 0 : index
    %c0_1 = arith.constant 0 : index
    %0 = vector.load %arg2[%c0, %c0_0, %c0_1] : memref<1x4x128xf32, #tpu.memory_space<vmem>>, vector<1x4x128xf32>
    %1 = vector.shape_cast %0 : vector<1x4x128xf32> to vector<4x128xf32>
    %2 = arith.mulf %1, %1 : vector<4x128xf32>
    %c0_2 = arith.constant 0 : index
    %c0_3 = arith.constant 0 : index
    %3 = vector.load %arg3[%c0_2, %c0_3] : memref<4x4xf32, #tpu.memory_space<vmem>>, vector<4x4xf32>
    %cst = arith.constant dense<0.000000e+00> : vector<4x128xf32>
    %4 = tpu.matmul %3, %2, %cst {dimension_numbers = #tpu.dot_dimension_numbers<[1], [0], [0], [1], [0, 0, 1, 1], [], []>} : vector<4x4xf32>, vector<4x128xf32>, vector<4x128xf32> -> vector<4x128xf32>
    %c0_4 = arith.constant 0 : index
    %c0_5 = arith.constant 0 : index
    %5 = vector.load %arg4[%c0_4, %c0_5] : memref<4x1xf32, #tpu.memory_space<vmem>>, vector<4x1xf32>
    %6 = vector.broadcast %5 : vector<4x1xf32> to vector<4x128xf32>
    %7 = arith.addf %4, %6 : vector<4x128xf32>
    %8 = math.rsqrt %7 : vector<4x128xf32>
    %9 = arith.mulf %1, %8 : vector<4x128xf32>
    %c0_6 = arith.constant 0 : index
    %c0_7 = arith.constant 0 : index
    %c0_8 = arith.constant 0 : index
    %10 = vector.load %arg5[%c0_6, %c0_7, %c0_8] : memref<1x4x128xf32, #tpu.memory_space<vmem>>, vector<1x4x128xf32>
    %11 = vector.shape_cast %10 : vector<1x4x128xf32> to vector<4x128xf32>
    %12 = vector.shape_cast %9 : vector<4x128xf32> to vector<1x4x128xf32>
    tpu.vector_store %arg5[%c0_6, %c0_7, %c0_8], %12 {strides = array<i32>} : memref<1x4x128xf32, #tpu.memory_space<vmem>>, vector<1x4x128xf32>,
    return
  }
  func.func @transform_0(%arg0: i32, %arg1: i32) -> (i32, i32, i32) {
    %c0_i32 = arith.constant 0 : i32
    %c0_i32_0 = arith.constant 0 : i32
    return %arg0, %c0_i32, %arg1 : i32, i32, i32
  }
  func.func @transform_1(%arg0: i32, %arg1: i32) -> (i32, i32) {
    %c0_i32 = arith.constant 0 : i32
    %c0_i32_0 = arith.constant 0 : i32
    %c0_i32_1 = arith.constant 0 : i32
    return %c0_i32, %c0_i32_0 : i32, i32
  }
  func.func @transform_2(%arg0: i32, %arg1: i32) -> (i32, i32) {
    %c0_i32 = arith.constant 0 : i32
    %c0_i32_0 = arith.constant 0 : i32
    %c0_i32_1 = arith.constant 0 : i32
    return %c0_i32, %c0_i32_0 : i32, i32
  }
  func.func @transform_3(%arg0: i32, %arg1: i32) -> (i32, i32, i32) {
    %c0_i32 = arith.constant 0 : i32
    %c0_i32_0 = arith.constant 0 : i32
    return %arg0, %c0_i32, %arg1 : i32, i32, i32
  }
}

</mosaic_0001>

<bundles_post_ra>
// kernel: tpu_custom_call.1
= control target key start
LH: loop header
LB: loop body
LE: loop exit
PB: predicated region body
PF: predicated region fallthrough
CT: control target
= control target key end

     0   :  { %8 = vsyncpa [#allocation3], 0  ;;  %s816_s0 = inlined_call_operand.hbm [shape: f32[2,4,256], index: 0, kind: input, shape index: {}]   ;;  %s817_s1 = inlined_call_operand.vmem [shape: f32[4,4], index: 1, kind: input, shape index: {}]   ;;  %s818_s2 = inlined_call_operand.vmem [shape: f32[4,1], index: 2, kind: input, shape index: {}]   ;;  %s819_s3 = inlined_call_operand.hbm [shape: f32[2,4,256], index: 3, kind: output, shape index: {}]  }
   0x1   :  { %10 = vsyncpa [#allocation3 + $0x1], 0 }
   0x2   :  { %11 = vsyncpa [#allocation4], 0 }
   0x3   :  { %13 = vsyncpa [#allocation4 + $0x1], 0  ;;  %s654_s12 = smov 0   ;;  %s656_s13 = smov 0  }
   0x4   :  { %s658_s14 = smov 0   ;;  %s660_s15 = smov 0  }
   0x5   :  { %s662_s16 = smov 0   ;;  %s664_s17 = smov 0  }
   0x6   :  { %s666_s18 = smov 0   ;;  %s668_s19 = smov 0  }
   0x7 LB: > { %s395_s20 = sadd.s32 4294967295, %s627_s19   ;;  %s396_s21 = sadd.s32 4294967294, %s627_s19   ;;  %s627_s19 = sphi %s668_s19, %s19_s19   ;;  %s623_s18 = sphi %s666_s18, %s835_s18   ;;  %s619_s17 = sphi %s664_s17, %s834_s17   ;;  %s615_s16 = sphi %s662_s16, %s833_s16   ;;  %s611_s15 = sphi %s660_s15, %s832_s15   ;;  %s607_s14 = sphi %s658_s14, %s831_s14   ;;  %s603_s13 = sphi %s656_s13, %s830_s13   ;;  %s599_s12 = sphi %s654_s12, %s829_s12  }
   0x8   : > { %s28_s22 = sadd.s32 1, %s619_s17  ;;  %s31_s23 = sadd.s32 1, %s623_s18 }
   0x9   : > { %p29_p0 = scmp.ge.s32.totalorder %s28_s22, 2  ;;  %s40_s24 = sadd.s32 1, %s607_s14 }
   0xa   : > { %p47_p1 = scmp.ne.s32.totalorder %s607_s14, %s603_s13  ;;  %p48_p2 = scmp.eq.s32.totalorder %s627_s19, 0 }
   0xb   : > { %s837_s22 = smov (%p29_p0, %s28_s22), 0  ;;  %s839_s23 = smov (!%p29_p0, %s31_s23), %s623_s18 }
   0xc   : > { %s36_s25 = ssub.s32 %s619_s17, %s837_s22  ;;  %p707_p3 = por %p48_p2, %p47_p1 }
   0xd   : > { %p33_p4 = scmp.ge.s32.totalorder %s839_s23, 2  ;;  %p53_p5 = scmp.ne.s32.totalorder %s603_s13, %s599_s12 }
   0xe   : > { %p54_p6 = scmp.eq.s32.totalorder %s395_s20, 0  ;;  %p121_p7 = scmp.eq.s32.totalorder %s395_s20, 3 }
   0xf   : > { %s841_s23 = smov (%p33_p4, %s839_s23), 0  ;;  %p127_p10 = scmp.eq.s32.totalorder %s396_s21, 3 }
  0x10   : > { %822 = sst [smem:[#allocation8_spill]] %s841_s23  ;;  %p715_p8 = por %p54_p6, %p53_p5 }
  0x11   : > { %p719_p9 = por %p121_p7, %p47_p1  ;;  %s35_s29 = ssub.s32 %s623_s18, %s841_s23 }
  0x12   : > { %s37_s30 = sor.u32 %s36_s25, %s35_s29  ;;  %p725_p12 = por %p127_p10, %p53_p5 }
  0x13   : > { %p38_p11 = scmp.eq.s32.totalorder %s37_s30, 0  ;;  %p431_p13 = scmp.lt.s32.totalorder %s627_s19, 4 }
  0x14   : > { %s825_s4 = scalar_select %p725_p12, 1, 0 }
  0x15   : > { %s153_s5 = sand.u32 1, %s607_s14   ;;  %s400_s8 = sshll.u32 %s623_s18, 1 }
  0x16   : > { %s732_s6 = scalar_select %p38_p11, %s607_s14, %s40_s24  }
  0x17   : > { %s399_s7 = sshll.u32 %s153_s5, 2  ;;  %s162_s9 = sadd.s32 %s619_s17, %s400_s8 }
  0x18   : > { %s157_s10 = scalar_lea.vmem [#allocation2], %s399_s7  ;;  %s401_s20 = sshll.u32 %s162_s9, 6 }
  0x19   : > { %s166_s11 = sshll.u32 %s157_s10, 4  ;;  %s164_s25 = scalar_lea.hbm %s816_s0, %s401_s20  ;;  %s167_s11 = int_to_ptr.vmem [resolvable:$true] %s166_s11 }
  0x1a   : > { %p741_p0 = pnand %p431_p13, %p707_p3  ;;  %p402_p1 = scmp.ge.s32.totalorder %s627_s19, 1 }
  0x1b   : > { %p171_p2 = scmp.lt.s32.totalorder %s627_s19, 5  ;;  %s154_s24 = scalar_lea.sflag [#allocation3], %s153_s5 }
  0x1c   : > { %p505_p4 = pneg %p741_p0  ;;  %s516_s30 = scalar_lea.vmem %s167_s11, 64 }
  0x1d   : > { %p517_p5 = scmp.ne.s32.totalorder %s167_s11, %s516_s30  ;;  %s629_s7 = smov [#allocation2]  }
  0x1e   : > { %s521_s8 = sshll.u32 %s629_s7, 4  ;;  %s522_s8 = int_to_ptr.vmem [resolvable:$false] %s521_s8 }
  0x1f   : > { %p519_p6 = pnand %p517_p5, %p505_p4  ;;  %s523_s23 = scalar_lea.vmem %s522_s8, 128 }
  0x20   : > { %p524_p10 = scmp.lt.s32.totalorder %s167_s11, %s522_s8  ;;  %p525_p11 = scmp.lt.s32.totalorder %s523_s23, %s516_s30 }
  0x21   : > { %p520_p7 = pneg %p519_p6 }
  0x22   : > { %p526_p3 = por %p525_p11, %p524_p10 }
  0x24   : > { %p527_p13 = pnand %p526_p3, %p520_p7 }
  0x26   : > { %530 = shalt.err (!%p527_p13)
}
  0x27   : > { %426 = dma.hbm_to_vmem [thread:$0]  (!%p741_p0), %s164_s25, 64, %s167_s11, %s154_s24  }
  0x28   : > { %p172_p12 = pnand %p402_p1, %p171_p2 }
  0x29   : > { %s756_s26 = sand.u32 (!%p172_p12), 1, %s603_s13  }
  0x2a   : > { %175 = sbr.rel (%p172_p12) target bundleno = 276 (0x114), region = 32  ;;  %s403_s5 = sshll.u32 (!%p172_p12), %s756_s26, 2 }
  0x2b   : > { %s178_s9 = scalar_lea.sflag (!%p172_p12), [#allocation3], %s756_s26  ;;  %s181_s10 = scalar_lea.vmem (!%p172_p12), [#allocation2], %s403_s5 }
  0x2f   : > { %590 = dma.done.wait (%p715_p8), %s178_s9, 64  }
  0x30   : > { %592 = vsyncadd (%p715_p8), %s178_s9, 4294967232  ;;  %v630_v0 = vmov 0.0   ;;  %vm631_vm0 = vmmov 0   ;;  %v632_v1 = vmov 0   ;;  %v204_v2 = vld [vmem:[%s181_s10] sm:$0xf] }
  0x31   : > { %414 = vmatprep.subr.mxu0 %v630_v0  ;;  %416 = vmatprep.mubr.msk.f32.mxu0 %vm631_vm0, %v630_v0  ;;  %vm217_vm1 = vcmask 1043456   ;;  %v207_v3 = vld [vmem:[%s818_s2] sm:$0xf]  ;;  %v205_v4 = vmul.f32 %v204_v2, %v204_v2  ;;  %vm213_vm2 = vcmask 31744   ;;  %s408_s27 = sshll.u32 %s615_s16, 1  ;;  %s203_s30 = scalar_lea.vmem [#allocation5], %s403_s5 }
  0x32   : > { %500 = vset.pattern.permute.xlu0 %v632_v1  ;;  %v206_v5 = vld [vmem:[%s817_s1] sm:$0xf]  ;;  %s306_s29 = sadd.s32 %s611_s15, %s408_s27  ;;  %s310_s7 = sshll.u32 %s203_s30, 4  ;;  %s311_s7 = int_to_ptr.vmem [resolvable:$true] %s310_s7 }
  0x33   : > { %210 = vperm.xlu0 %500, %v207_v3   ;;  %415 = vmatpush3.msk.msra.mxu0 %vm217_vm1, %v205_v4  ;;  %s409_s24 = sshll.u32 %s306_s29, 6  ;;  %s295_s10 = scalar_lea.sflag [#allocation4], %s756_s26 }
  0x34   : > { %417 = vmatmul.mubr.msk.f32.vlgmr.msra.gmra.mxu0 %vm213_vm2, %v206_v5  ;;  %s308_s9 = scalar_lea.hbm %s819_s3, %s409_s24  ;;  %s531_s11 = scalar_lea.vmem %s311_s7, 64 }
  0x35   : > { %p532_p8 = scmp.ne.s32.totalorder %s311_s7, %s531_s11  ;;  %s633_s20 = smov [#allocation5]  }
  0x36   : > { %s535_s16 = sshll.u32 %s633_s20, 4  ;;  %s536_s16 = int_to_ptr.vmem [resolvable:$false] %s535_s16 }
  0x37   : > { %p533_p12 = pnand %p532_p8, %p719_p9  ;;  %s537_s15 = scalar_lea.vmem %s536_s16, 128 }
  0x38   : > { %p538_p1 = scmp.lt.s32.totalorder %s311_s7, %s536_s16  ;;  %p539_p2 = scmp.lt.s32.totalorder %s537_s15, %s531_s11 }
  0x39   : > { %p534_p0 = pneg %p533_p12 }
  0x3a   : > { %p540_p4 = por %p539_p2, %p538_p1 }
  0x3c   : > { %p541_p5 = pnand %p540_p4, %p534_p0 }
  0xae   : > { %v211_v6 = vpop.permute.xlu0 %210 }
  0xf4   : > { %v287_v7 = vpop.f32.mrf.mxu0 }
  0xf5   : > { %v288_v8 = vadd.f32 %v287_v7, %v211_v6 }
  0xf6   : > { %v418_v9 = vpop.f32.mrf.mxu0 }
  0xf7   : > { %501 = vrsqrt.f32 %v288_v8 }
 0x104   : > { %v502_v10 = vpop.eup %501 }
 0x105   : > { %v292_v11 = vmul.f32 %v502_v10, %v204_v2 }
 0x107   : > { %293 = vst [vmem:[%s203_s30] sm:$0xf] %v292_v11 }
 0x108   : > { %544 = shalt.err (!%p541_p5)
}
 0x109   : > { %s545_s5 = scalar_lea.hbm %s308_s9, 64  ;;  %s549_s25 = scalar_lea.hbm %s819_s3, 256 }
 0x10a   : > { %p546_p6 = scmp.ne.s32.totalorder %s308_s9, %s545_s5  ;;  %p550_p11 = scmp.lt.s32.totalorder %s308_s9, %s819_s3 }
 0x10b   : > { %p551_p3 = scmp.lt.s32.totalorder %s549_s25, %s545_s5 }
 0x10c   : > { %p547_p7 = pnand %p546_p6, %p719_p9 }
 0x10d   : > { %p552_p13 = por %p551_p3, %p550_p11 }
 0x10e   : > { %p548_p10 = pneg %p547_p7 }
 0x110   : > { %p553_p8 = pnand %p552_p13, %p548_p10 }
 0x112   : > { %556 = shalt.err (!%p553_p8)
}
 0x113   : > { %421 = dma.vmem_to_hbm [thread:$0]  (%p719_p9), %s311_s7, 64, %s308_s9, %s295_s10  }
 0x114 PF: > { %p432_p12 = scmp.ge.s32.totalorder %s627_s19, 2  ;;  %s322_s24 = sand.u32 1, %s599_s12  }
 0x115   : > { %p827_p0 = scmp.ne.s32.totalorder %s825_s4, 0  ;;  %s323_s30 = scalar_lea.sflag [#allocation4], %s322_s24 }
 0x117   : > { %p428_p1 = pnand %p432_p12, %p827_p0 }
 0x119   : > { %p429_p2 = pneg %p428_p1 }
 0x11b   : > { %594 = dma.done.wait (%p429_p2), %s323_s30, 64  }
 0x11c   : > { %596 = vsyncadd (%p429_p2), %s323_s30, 4294967232  ;;  %s19_s19 = sadd.s32 1, %s627_s19   ;;  %s828_s28 = sld [smem:[#allocation8_spill]] }
 0x11d   : > { %p16_p4 = scmp.ge.s32.totalorder %s19_s19, 6   ;;  %s829_s12 = smov %s603_s13 }
 0x11e   : > { %s830_s13 = smov %s607_s14  ;;  %s831_s14 = smov %s732_s6 }
 0x11f   : > { %s832_s15 = smov %s619_s17  ;;  %s833_s16 = smov %s623_s18 }
 0x120   : > { %s834_s17 = smov %s837_s22  ;;  %18 = sbr.rel (!%p16_p4) target bundleno = 7 (0x7), region = 77 }
 0x122   : > { %s835_s18 = smov %s828_s28 }
 0x125   :  { %328 = vsyncpa [#allocation3], 1 }
 0x126   :  { %330 = vsyncpa [#allocation3 + $0x1], 1 }
 0x127   :  { %331 = vsyncpa [#allocation4], 1 }
 0x128   :  { %333 = vsyncpa [#allocation4 + $0x1], 1 }

</bundles_post_ra>
